<compile_context>
chip_gen: v5e
topology: v5e:2x2
jax: 0.10.0
libtpu: 0.0.40
codegen_flags: <defaults>
</compile_context>

<pallas_src>
import math

import jax
import jax.numpy as jnp
from jax import lax
from jax.experimental import pallas as pl
from jax.experimental.pallas import tpu as pltpu


def tcn_vil_unit_forward(x_nchw, w, b, bn_gamma, bn_beta, bn_mean, bn_var,
                         eps=1e-5, kernel_size=5, out_dtype=None, batch_block=None):
    """Fused temporal Conv2d(K,1) + BatchNorm(eval) + identity residual + ReLU."""
    B, C, T, V = x_nchw.shape
    Cout = w.shape[0]
    assert Cout == C, "identity residual path requires in_channels == out_channels"
    # TODO(synk): stride != 1 / Cout != Cin residual branch (1x1 unit_tcn) not implemented.
    K = kernel_size
    pad = (K - 1) // 2
    L = T * V
    assert T > 2 * pad, "temporal length must exceed the conv halo"
    if out_dtype is None:
        out_dtype = x_nchw.dtype

    # ---- wrapper: reshape only (contiguous, free). No pad / cast / transpose HBM passes. ----
    x3 = x_nchw.reshape(B, C, L)

    # Fold BN scale into the conv weights; BN shift (incl. conv bias) becomes a per-row add.
    scale = bn_gamma / jnp.sqrt(bn_var + eps)
    shift = bn_beta + scale * (b - bn_mean)
    wk = jnp.transpose(w[:, :, :, 0], (2, 0, 1)) * scale[None, :, None]     # (K, Cout, Cin)
    wk = wk.astype(jnp.bfloat16)
    shift2d = shift.reshape(Cout, 1).astype(jnp.float32)

    # ---- batch grouping: NB batches per grid step ----
    if batch_block is None:
        bytes_per_batch = C * L * x3.dtype.itemsize
        # <= ~1 MiB input block (safe vs v5e 16 MiB scoped / v7x 64 MiB physical with
        # double-buffered in+out blocks), and cap the in-kernel unroll at 8.
        cap = max(1, min(8, (1 << 20) // max(1, bytes_per_batch)))
        # Keep at least two grid steps when B >= 2 so the v7x megacore gets work on both cores.
        tgt = pl.cdiv(B, 2) if B >= 2 else 1
        nb_max = max(1, min(B, cap, tgt))
        NB = max(d for d in range(1, nb_max + 1) if B % d == 0)   # divisor -> no ragged last block
    else:
        NB = batch_block
        assert B % NB == 0, "batch_block must divide the batch size"
    grid = (B // NB,)

    def kernel(x_ref, w_ref, sh_ref, o_ref):
        sh = sh_ref[...]                                          # (Cout, 1) f32, resident

        def one_batch(nb, carry):
            xb_f32 = x_ref[nb]                                    # (C, L) f32
            xb = xb_f32.astype(jnp.bfloat16)                      # MXU operand
            acc = jnp.zeros((Cout, L), jnp.float32)
            # K accumulated MXU dots; temporal halo handled by zero-filled shifted taps
            # (static lane slice + concat, no roll, no wrapper padding).
            for dt in range(K):
                s = (dt - pad) * V
                if s == 0:
                    tap = xb
                elif s > 0:
                    tap = jnp.concatenate(
                        [xb[:, s:], jnp.zeros((C, s), jnp.bfloat16)], axis=1)
                else:
                    tap = jnp.concatenate(
                        [jnp.zeros((C, -s), jnp.bfloat16), xb[:, :L + s]], axis=1)
                acc = acc + jnp.dot(w_ref[dt], tap,
                                    preferred_element_type=jnp.float32)
            # BN shift (+conv bias) + full-precision identity residual + ReLU.
            y = acc + sh + xb_f32
            o_ref[nb] = jnp.maximum(y, 0.0).astype(o_ref.dtype)
            return carry

        lax.fori_loop(0, NB, one_batch, 0, unroll=True)

    out = pl.pallas_call(
        kernel,
        out_shape=jax.ShapeDtypeStruct((B, Cout, L), out_dtype),
        grid_spec=pltpu.PrefetchScalarGridSpec(
            num_scalar_prefetch=0,
            grid=grid,
            in_specs=[
                pl.BlockSpec((NB, C, L), lambda i: (i, 0, 0)),        # activation block
                pl.BlockSpec((K, Cout, C), lambda i: (0, 0, 0)),      # folded weights (resident)
                pl.BlockSpec((Cout, 1), lambda i: (0, 0)),            # BN/bias shift (resident)
            ],
            out_specs=pl.BlockSpec((NB, Cout, L), lambda i: (i, 0, 0)),
        ),
        compiler_params=pltpu.CompilerParams(
            dimension_semantics=("parallel",)),
    )(x3, wk, shift2d)

    # Already NCHW-ordered; reshape of contiguous data is free.
    return out.reshape(B, Cout, T, V)


if __name__ == "__main__":
    # Shapes consistent with the module: (B, C, T, V=num_point)
    B, C, T, V = 2, 32, 16, 25
    K = 5
    Cout = C          # in_channels == out_channels, stride == 1 -> identity residual

    key = jax.random.PRNGKey(0)
    kx, kw = jax.random.split(key)
    x = jax.random.normal(kx, (B, C, T, V), jnp.float32)

    # conv_init: kaiming_normal fan_out -> std = sqrt(2 / (Cout * KH * KW)); bias = 0
    std = math.sqrt(2.0 / (Cout * K * 1))
    w = jax.random.normal(kw, (Cout, C, K, 1), jnp.float32) * std
    b = jnp.zeros((Cout,), jnp.float32)
    # bn_init(bn, 1): gamma = 1, beta = 0; fresh running stats: mean = 0, var = 1 (eval mode)
    gamma = jnp.ones((Cout,), jnp.float32)
    beta = jnp.zeros((Cout,), jnp.float32)
    mean = jnp.zeros((Cout,), jnp.float32)
    var = jnp.ones((Cout,), jnp.float32)

    y = tcn_vil_unit_forward(x, w, b, gamma, beta, mean, var, kernel_size=K)
    y = jax.block_until_ready(y)

    # pure-JAX f32 reference for the same forward semantics
    pad = (K - 1) // 2
    conv = jax.lax.conv_general_dilated(
        x, w, window_strides=(1, 1), padding=((pad, pad), (0, 0)),
        dimension_numbers=("NCHW", "OIHW", "NCHW"),
        precision=jax.lax.Precision.HIGHEST)
    scale = gamma / jnp.sqrt(var + 1e-5)
    shift = beta + scale * (b - mean)
    ref = jnp.maximum(
        conv * scale[None, :, None, None] + shift[None, :, None, None] + x, 0.0)

    assert y.shape == (B, Cout, T, V)
    # conv path computed in bf16 (f32 accumulation, f32 residual) vs f32 HIGHEST reference
    assert jnp.allclose(y, ref, atol=3e-2, rtol=3e-2), \
        float(jnp.max(jnp.abs(y - ref)))
    print("KERNEL_OK")
</pallas_src>

<mosaic_0001>
module attributes {stable_mosaic.version = 11 : i64} {
  func.func @kernel(%arg0: i32, %arg1: memref<1x32x400xf32, #tpu.memory_space<vmem>>, %arg2: memref<5x32x32xbf16, #tpu.memory_space<vmem>>, %arg3: memref<32x1xf32, #tpu.memory_space<vmem>>, %arg4: memref<1x32x400xf32, #tpu.memory_space<vmem>>) attributes {dimension_semantics = [#tpu.dimension_semantics<parallel>], iteration_bounds = array<i64: 2>, scalar_prefetch = 0 : i64, scratch_operands = 0 : i64, tpu.core_type = #tpu.core_type<tc>, window_params = [{transform_indices = @transform_0, window_bounds = array<i64: 1, 32, 400>}, {pipeline_mode = #tpu.pipeline_mode<synchronous>, transform_indices = @transform_1, window_bounds = array<i64: 5, 32, 32>}, {pipeline_mode = #tpu.pipeline_mode<synchronous>, transform_indices = @transform_2, window_bounds = array<i64: 32, 1>}, {transform_indices = @transform_3, window_bounds = array<i64: 1, 32, 400>}]} {
    %c0 = arith.constant 0 : index
    %c0_0 = arith.constant 0 : index
    %0 = vector.load %arg3[%c0, %c0_0] : memref<32x1xf32, #tpu.memory_space<vmem>>, vector<32x1xf32>
    %c0_i32 = arith.constant 0 : i32
    %1 = arith.index_cast %c0_i32 : i32 to index
    %c0_1 = arith.constant 0 : index
    %c0_2 = arith.constant 0 : index
    %2 = vector.load %arg1[%1, %c0_1, %c0_2] : memref<1x32x400xf32, #tpu.memory_space<vmem>>, vector<1x32x400xf32>
    %3 = vector.shape_cast %2 : vector<1x32x400xf32> to vector<32x400xf32>
    %4 = arith.truncf %3 : vector<32x400xf32> to vector<32x400xbf16>
    %cst = arith.constant 0.000000e+00 : f32
    %5 = vector.broadcast %cst : f32 to vector<32x400xf32>
    %cst_3 = arith.constant 0.000000e+00 : bf16
    %6 = vector.broadcast %cst_3 : bf16 to vector<32x50xbf16>
    %7 = vector.extract_strided_slice %4 {offsets = [0, 0], sizes = [32, 350], strides = [1, 1]} : vector<32x400xbf16> to vector<32x350xbf16>
    %8 = tpu.concatenate %6, %7 in 1 : vector<32x50xbf16>, vector<32x350xbf16> -> vector<32x400xbf16>
    %c0_4 = arith.constant 0 : index
    %c0_5 = arith.constant 0 : index
    %c0_6 = arith.constant 0 : index
    %9 = vector.load %arg2[%c0_4, %c0_5, %c0_6] : memref<5x32x32xbf16, #tpu.memory_space<vmem>>, vector<1x32x32xbf16>
    %10 = vector.shape_cast %9 : vector<1x32x32xbf16> to vector<32x32xbf16>
    %cst_7 = arith.constant dense<0.000000e+00> : vector<32x400xf32>
    %11 = tpu.matmul %10, %8, %cst_7 {dimension_numbers = #tpu.dot_dimension_numbers<[1], [0], [0], [1], [0, 0, 1, 1], [], []>} : vector<32x32xbf16>, vector<32x400xbf16>, vector<32x400xf32> -> vector<32x400xf32>
    %12 = arith.addf %5, %11 : vector<32x400xf32>
    %cst_8 = arith.constant 0.000000e+00 : bf16
    %13 = vector.broadcast %cst_8 : bf16 to vector<32x25xbf16>
    %14 = vector.extract_strided_slice %4 {offsets = [0, 0], sizes = [32, 375], strides = [1, 1]} : vector<32x400xbf16> to vector<32x375xbf16>
    %15 = tpu.concatenate %13, %14 in 1 : vector<32x25xbf16>, vector<32x375xbf16> -> vector<32x400xbf16>
    %c1 = arith.constant 1 : index
    %c0_9 = arith.constant 0 : index
    %c0_10 = arith.constant 0 : index
    %16 = vector.load %arg2[%c1, %c0_9, %c0_10] : memref<5x32x32xbf16, #tpu.memory_space<vmem>>, vector<1x32x32xbf16>
    %17 = vector.shape_cast %16 : vector<1x32x32xbf16> to vector<32x32xbf16>
    %cst_11 = arith.constant dense<0.000000e+00> : vector<32x400xf32>
    %18 = tpu.matmul %17, %15, %cst_11 {dimension_numbers = #tpu.dot_dimension_numbers<[1], [0], [0], [1], [0, 0, 1, 1], [], []>} : vector<32x32xbf16>, vector<32x400xbf16>, vector<32x400xf32> -> vector<32x400xf32>
    %19 = arith.addf %12, %18 : vector<32x400xf32>
    %c2 = arith.constant 2 : index
    %c0_12 = arith.constant 0 : index
    %c0_13 = arith.constant 0 : index
    %20 = vector.load %arg2[%c2, %c0_12, %c0_13] : memref<5x32x32xbf16, #tpu.memory_space<vmem>>, vector<1x32x32xbf16>
    %21 = vector.shape_cast %20 : vector<1x32x32xbf16> to vector<32x32xbf16>
    %cst_14 = arith.constant dense<0.000000e+00> : vector<32x400xf32>
    %22 = tpu.matmul %21, %4, %cst_14 {dimension_numbers = #tpu.dot_dimension_numbers<[1], [0], [0], [1], [0, 0, 1, 1], [], []>} : vector<32x32xbf16>, vector<32x400xbf16>, vector<32x400xf32> -> vector<32x400xf32>
    %23 = arith.addf %19, %22 : vector<32x400xf32>
    %24 = vector.extract_strided_slice %4 {offsets = [0, 25], sizes = [32, 375], strides = [1, 1]} : vector<32x400xbf16> to vector<32x375xbf16>
    %cst_15 = arith.constant 0.000000e+00 : bf16
    %25 = vector.broadcast %cst_15 : bf16 to vector<32x25xbf16>
    %26 = tpu.concatenate %24, %25 in 1 : vector<32x375xbf16>, vector<32x25xbf16> -> vector<32x400xbf16>
    %c3 = arith.constant 3 : index
    %c0_16 = arith.constant 0 : index
    %c0_17 = arith.constant 0 : index
    %27 = vector.load %arg2[%c3, %c0_16, %c0_17] : memref<5x32x32xbf16, #tpu.memory_space<vmem>>, vector<1x32x32xbf16>
    %28 = vector.shape_cast %27 : vector<1x32x32xbf16> to vector<32x32xbf16>
    %cst_18 = arith.constant dense<0.000000e+00> : vector<32x400xf32>
    %29 = tpu.matmul %28, %26, %cst_18 {dimension_numbers = #tpu.dot_dimension_numbers<[1], [0], [0], [1], [0, 0, 1, 1], [], []>} : vector<32x32xbf16>, vector<32x400xbf16>, vector<32x400xf32> -> vector<32x400xf32>
    %30 = arith.addf %23, %29 : vector<32x400xf32>
    %31 = vector.extract_strided_slice %4 {offsets = [0, 50], sizes = [32, 350], strides = [1, 1]} : vector<32x400xbf16> to vector<32x350xbf16>
    %cst_19 = arith.constant 0.000000e+00 : bf16
    %32 = vector.broadcast %cst_19 : bf16 to vector<32x50xbf16>
    %33 = tpu.concatenate %31, %32 in 1 : vector<32x350xbf16>, vector<32x50xbf16> -> vector<32x400xbf16>
    %c4 = arith.constant 4 : index
    %c0_20 = arith.constant 0 : index
    %c0_21 = arith.constant 0 : index
    %34 = vector.load %arg2[%c4, %c0_20, %c0_21] : memref<5x32x32xbf16, #tpu.memory_space<vmem>>, vector<1x32x32xbf16>
    %35 = vector.shape_cast %34 : vector<1x32x32xbf16> to vector<32x32xbf16>
    %cst_22 = arith.constant dense<0.000000e+00> : vector<32x400xf32>
    %36 = tpu.matmul %35, %33, %cst_22 {dimension_numbers = #tpu.dot_dimension_numbers<[1], [0], [0], [1], [0, 0, 1, 1], [], []>} : vector<32x32xbf16>, vector<32x400xbf16>, vector<32x400xf32> -> vector<32x400xf32>
    %37 = arith.addf %30, %36 : vector<32x400xf32>
    %38 = vector.broadcast %0 : vector<32x1xf32> to vector<32x400xf32>
    %39 = arith.addf %37, %38 : vector<32x400xf32>
    %40 = arith.addf %39, %3 : vector<32x400xf32>
    %cst_23 = arith.constant 0.000000e+00 : f32
    %41 = vector.broadcast %cst_23 : f32 to vector<32x400xf32>
    %42 = arith.maximumf %40, %41 : vector<32x400xf32>
    %43 = arith.index_cast %c0_i32 : i32 to index
    %c0_24 = arith.constant 0 : index
    %c0_25 = arith.constant 0 : index
    %44 = vector.load %arg4[%43, %c0_24, %c0_25] : memref<1x32x400xf32, #tpu.memory_space<vmem>>, vector<1x32x400xf32>
    %45 = vector.shape_cast %44 : vector<1x32x400xf32> to vector<32x400xf32>
    %46 = vector.shape_cast %42 : vector<32x400xf32> to vector<1x32x400xf32>
    tpu.vector_store %arg4[%43, %c0_24, %c0_25], %46 {strides = array<i32>} : memref<1x32x400xf32, #tpu.memory_space<vmem>>, vector<1x32x400xf32>,
    %c1_i32 = arith.constant 1 : i32
    return
  }
  func.func @transform_0(%arg0: i32) -> (i32, i32, i32) {
    %c0_i32 = arith.constant 0 : i32
    %c0_i32_0 = arith.constant 0 : i32
    %c0_i32_1 = arith.constant 0 : i32
    return %arg0, %c0_i32, %c0_i32_0 : i32, i32, i32
  }
  func.func @transform_1(%arg0: i32) -> (i32, i32, i32) {
    %c0_i32 = arith.constant 0 : i32
    %c0_i32_0 = arith.constant 0 : i32
    %c0_i32_1 = arith.constant 0 : i32
    %c0_i32_2 = arith.constant 0 : i32
    return %c0_i32, %c0_i32_0, %c0_i32_1 : i32, i32, i32
  }
  func.func @transform_2(%arg0: i32) -> (i32, i32) {
    %c0_i32 = arith.constant 0 : i32
    %c0_i32_0 = arith.constant 0 : i32
    %c0_i32_1 = arith.constant 0 : i32
    return %c0_i32, %c0_i32_0 : i32, i32
  }
  func.func @transform_3(%arg0: i32) -> (i32, i32, i32) {
    %c0_i32 = arith.constant 0 : i32
    %c0_i32_0 = arith.constant 0 : i32
    %c0_i32_1 = arith.constant 0 : i32
    return %arg0, %c0_i32, %c0_i32_0 : i32, i32, i32
  }
}

</mosaic_0001>

<bundles_post_ra>
// kernel: tpu_custom_call.1
= control target key start
LH: loop header
LB: loop body
LE: loop exit
PB: predicated region body
PF: predicated region fallthrough
CT: control target
= control target key end

     0   :  { %8 = vsyncpa [#allocation3], 0  ;;  %s1963_s0 = inlined_call_operand.hbm [shape: f32[2,32,400], index: 0, kind: input, shape index: {}]   ;;  %s1964_s1 = inlined_call_operand.hbm [shape: bf16[5,32,32], index: 1, kind: input, shape index: {}]   ;;  %s1965_s2 = inlined_call_operand.vmem [shape: f32[32,1], index: 2, kind: input, shape index: {}]   ;;  %s1966_s3 = inlined_call_operand.hbm [shape: f32[2,32,400], index: 3, kind: output, shape index: {}]  }
   0x1   :  { %10 = vsyncpa [#allocation3 + $0x1], 0 }
   0x2   :  { %11 = vsyncpa [#allocation6], 0 }
   0x3   :  { %12 = vsyncpa [#allocation4], 0 }
   0x4   :  { %14 = vsyncpa [#allocation4 + $0x1], 0  ;;  %s1474_s12 = smov 0   ;;  %s1476_s13 = smov 0  }
   0x5   :  { %s1478_s14 = smov 0   ;;  %s1480_s15 = smov 0  }
   0x6 LB: > { %s1495_s16 = sadd.s32 4294967295, %s1440_s15   ;;  %s1123_s17 = sadd.s32 4294967294, %s1440_s15   ;;  %s1440_s15 = sphi %s1480_s15, %s1999_s15   ;;  %s1436_s14 = sphi %s1478_s14, %s1998_s14   ;;  %s1432_s13 = sphi %s1476_s13, %s1997_s13   ;;  %s1428_s12 = sphi %s1474_s12, %s1996_s12  }
   0x7   : > { %p40_p0 = scmp.ne.s32.totalorder %s1432_s13, %s1428_s12  ;;  %p41_p1 = scmp.eq.s32.totalorder %s1495_s16, 0 }
   0x8   : > { %p106_p2 = scmp.eq.s32.totalorder %s1495_s16, 1  ;;  %p112_p3 = scmp.eq.s32.totalorder %s1123_s17, 1 }
   0x9   : > { %p1504_p4 = por %p41_p1, %p40_p0  ;;  %p1124_p5 = scmp.ge.s32.totalorder %s1440_s15, 1 }
   0xa   : > { %p1509_p6 = por %p112_p3, %p40_p0  ;;  %p119_p7 = scmp.lt.s32.totalorder %s1440_s15, 3 }
   0xb   : > { %s130_s22 = sshll.u32 %s1964_s1, 4  ;;  %s1442_s24 = smov [#allocation5]   ;;  %s131_s22 = int_to_ptr.hbm [resolvable:$true] %s130_s22 }
   0xc   : > { %p1517_p8 = pnand %p1124_p5, %p119_p7  ;;  %s132_s25 = sshll.u32 %s1442_s24, 4  ;;  %s133_s25 = int_to_ptr.vmem [resolvable:$true] %s132_s25 }
   0xd   : > { %s1527_s26 = sadd.s32 1, %s1440_s15   ;;  %s1443_s27 = smov 64  }
   0xe   : > { %p1247_p9 = pneg %p1517_p8  ;;  %s1444_s28 = smov 4  }
   0xf   : > { %s24_s29 = ssub.s32 %s1440_s15, %s1527_s26  ;;  %s27_s30 = sadd.s32 1, %s1436_s14 }
  0x10   : > { %p1248_p10 = pnand %p1247_p9, %p41_p1  ;;  %p25_p12 = scmp.eq.s32.totalorder %s24_s29, 0 }
  0x11   : > { %p34_p13 = scmp.ne.s32.totalorder %s1436_s14, %s1432_s13  ;;  %p35_p0 = scmp.eq.s32.totalorder %s1440_s15, 0 }
  0x12   : > { %1250 = dma.hbm_to_vmem [thread:$0]  (!%p1248_p10), %s131_s22, 1280, %s133_s25, [#allocation6], %s1443_s27, %s1443_s27, %s1444_s28  }
  0x13   : > { %p1260_p3 = scmp.lt.s32.totalorder %s1440_s15, 2  ;;  %p36_p5 = por %p35_p0, %p34_p13 }
  0x14   : > { %s1537_s4 = scalar_select %p25_p12, %s1436_s14, %s27_s30  }
  0x15   : > { %p1541_p7 = por %p106_p2, %p34_p13  ;;  %s149_s6 = sand.u32 1, %s1436_s14  }
  0x16   : > { %s1227_s7 = sshll.u32 %s1440_s15, 7  ;;  %s1127_s8 = sshll.u32 %s149_s6, 7 }
  0x17   : > { %s158_s11 = scalar_lea.hbm %s1963_s0, %s1227_s7  ;;  %s153_s20 = scalar_lea.vmem [#allocation2], %s1127_s8 }
  0x18   : > { %s159_s17 = sshll.u32 %s158_s11, 4  ;;  %s161_s21 = sshll.u32 %s153_s20, 4  ;;  %s160_s17 = int_to_ptr.hbm [resolvable:$true] %s159_s17  ;;  %s162_s21 = int_to_ptr.vmem [resolvable:$true] %s161_s21 }
  0x19   : > { %p1552_p9 = pnand %p1260_p3, %p36_p5  ;;  %s150_s24 = scalar_lea.sflag [#allocation3], %s149_s6 }
  0x1a   : > { %s1340_s25 = sshra.s32 %s160_s17, 4  ;;  %s1347_s30 = scalar_lea.hbm %s1963_s0, 256  ;;  %s1341_s25 = int_to_ptr.hbm [resolvable:$true] %s1340_s25 }
  0x1b   : > { %s1342_s27 = scalar_lea.hbm %s1341_s25, 128  ;;  %p1344_p10 = pneg %p1552_p9 }
  0x1c   : > { %p1343_p2 = scmp.ne.s32.totalorder %s1341_s25, %s1342_s27  ;;  %p1348_p0 = scmp.lt.s32.totalorder %s1341_s25, %s1963_s0 }
  0x1d   : > { %p1349_p3 = scmp.lt.s32.totalorder %s1347_s30, %s1342_s27 }
  0x1e   : > { %p1345_p12 = pnand %p1344_p10, %p1343_p2 }
  0x1f   : > { %p1350_p5 = por %p1349_p3, %p1348_p0 }
  0x20   : > { %p1346_p13 = pneg %p1345_p12 }
  0x22   : > { %p1351_p11 = pnand %p1350_p5, %p1346_p13 }
  0x24   : > { %1354 = shalt.err (!%p1351_p11)
}
  0x25   : > { %s1445_s6 = smov 512   ;;  %s1446_s9 = smov 32  }
  0x26   : > { %1254 = dma.hbm_to_vmem [thread:$0]  (!%p1552_p9), %s160_s17, 2048, %s162_s21, %s150_s24, %s1445_s6, %s1445_s6, %s1446_s9  }
  0x27   : > { %173 = sbr.rel (%p1517_p8) target bundleno = 485 (0x1e5), region = 32 }
  0x2c   : > { %s1569_s10 = sand.u32 1, %s1432_s13  }
  0x2d   : > { %s1131_s11 = sshll.u32 %s1569_s10, 7  ;;  %s176_s20 = scalar_lea.sflag [#allocation3], %s1569_s10 }
  0x2e   : > { %s1575_s25 = scalar_lea.vmem [#allocation2], %s1131_s11 }
  0x2f   : > { %1415 = dma.done.wait (%p1504_p4), %s176_s20, 2048  }
  0x30   : > { %1417 = vsyncadd (%p1504_p4), %s176_s20, 4294965248 }
  0x31   : > { %1419 = dma.done.wait (%p41_p1), [#allocation6], 1280  }
  0x32   : > { %1421 = vsyncadd (%p41_p1), [#allocation6], 4294966016  ;;  %v1586_v0 = vld [vmem:[%s1575_s25 + $0x40] sm:$0xff]  ;;  %v1589_v1 = vld [vmem:[%s1575_s25 + $0x48] sm:$0xff]  ;;  %s1447_s18 = smov 25   ;;  %s1448_s23 = smov 50  }
  0x33   : > { %v1592_v2 = vld [vmem:[%s1575_s25 + $0x60] sm:$0xff]  ;;  %v1595_v3 = vld [vmem:[%s1575_s25 + $0x68] sm:$0xff]  ;;  %v233_v4 = vpack.c.bf16 %v1589_v1, %v1586_v0  ;;  %v1616_v11 = vld [vmem:[%s1575_s25 + $0x50] sm:$0xff]  ;;  %s1449_s17 = smov 103   ;;  %s1450_s21 = smov 78   ;;  %vm310_vm0 = vcmask 203776  }
  0x34   : > { %1977 = vst [vmem:[#allocation11_spill] sm:$0xff] %v1595_v3  ;;  %v1600_v5 = vld [vmem:[%s1575_s25] sm:$0xff]  ;;  %v1603_v6 = vld [vmem:[%s1575_s25 + $0x8] sm:$0xff]  ;;  %v235_v7 = vpack.c.bf16 %v1595_v3, %v1592_v2  ;;  %v1621_v14 = vld [vmem:[%s1575_s25 + $0x58] sm:$0xff]  ;;  %vm343_vm2 = vcmask 261120   ;;  %vm275_vm3 = vcmask 408576  }
  0x35   : > { %v1608_v8 = vld [vmem:[%s1575_s25 + $0x20] sm:$0xff]  ;;  %v1611_v9 = vld [vmem:[%s1575_s25 + $0x28] sm:$0xff]  ;;  %v229_v10 = vpack.c.bf16 %v1603_v6, %v1600_v5  ;;  %1978 = vst [vmem:[#allocation12_spill] sm:$0xff] %v1616_v11  ;;  %v252_v12 = vunpack.c.h.b16 %v233_v4  ;;  %v1624_v15 = vld [vmem:[%s1575_s25 + $0x70] sm:$0xff]  ;;  %v251_v17 = vunpack.c.l.b16 %v233_v4  ;;  %v234_v20 = vpack.c.bf16 %v1621_v14, %v1616_v11  ;;  %s1842_s6 = scalar_lea.vmem [#allocation7], %s1131_s11  ;;  %s1238_s9 = sshll.u32 %s1495_s16, 7 }
  0x36   : > { %v231_v13 = vpack.c.bf16 %v1611_v9, %v1608_v8  ;;  %1979 = vst [vmem:[#allocation13_spill] sm:$0xff] %v1621_v14  ;;  %v1627_v16 = vld [vmem:[%s1575_s25 + $0x78] sm:$0xff]  ;;  %v255_v18 = vunpack.c.h.b16 %v235_v7  ;;  %v1634_v22 = vld [vmem:[%s1575_s25 + $0x10] sm:$0xff]  ;;  %v254_v28 = vunpack.c.l.b16 %v235_v7  ;;  %vm1142_vm1 = vmneg %vm310_vm0  ;;  %vm661_vm5 = vcmask 842752   ;;  %s1037_s16 = sshll.u32 %s1842_s6, 4  ;;  %s1390_s27 = scalar_lea.hbm %s1966_s3, 256  ;;  %s1038_s16 = int_to_ptr.vmem [resolvable:$true] %s1037_s16 }
  0x37   : > { %1980 = vst [vmem:[#allocation14_spill] sm:$0xff] %v1624_v15  ;;  %v246_v19 = vunpack.c.h.b16 %v229_v10  ;;  %v236_v21 = vpack.c.bf16 %v1627_v16, %v1624_v15  ;;  %v1637_v23 = vld [vmem:[%s1575_s25 + $0x18] sm:$0xff]  ;;  %v1640_v24 = vld [vmem:[%s1575_s25 + $0x30] sm:$0xff]  ;;  %v253_v33 = vunpack.c.l.b16 %v234_v20  ;;  %v245_v37 = vunpack.c.l.b16 %v229_v10  ;;  %vm1162_vm4 = vmneg %vm275_vm3 }
  0x38   : > { %1981 = vst [vmem:[#allocation15_spill] sm:$0xff] %v1627_v16  ;;  %v249_v25 = vunpack.c.h.b16 %v231_v13  ;;  %v1643_v26 = vld [vmem:[%s1575_s25 + $0x38] sm:$0xff]  ;;  %v230_v27 = vpack.c.bf16 %v1637_v23, %v1634_v22  ;;  %v1647_v29 = vpack.c.b16 %v255_v18, %v252_v12  ;;  %v1653_v32 = vpack.c.b16 %v254_v28, %v251_v17  ;;  %v1230_v50 = vld [vmem:[#allocation5 + $0x10] sm:$0xff]  ;;  %v1228_v18 = vld [vmem:[#allocation5] sm:$0xff]  ;;  %s1036_s25 = scalar_lea.hbm %s1966_s3, %s1238_s9 }
  0x39   : > { %v232_v30 = vpack.c.bf16 %v1643_v26, %v1640_v24  ;;  %v256_v34 = vunpack.c.l.b16 %v236_v21  ;;  %v248_v38 = vunpack.c.l.b16 %v231_v13  ;;  %v535_v42 = vunpack.c.h.b16 %v234_v20  ;;  %v1231_v54 = vld [vmem:[#allocation5 + $0x18] sm:$0xff] }
  0x3a   : > { %v1651_v31 = vpack.c.b16 %v249_v25, %v246_v19  ;;  %306 = vrot.lane.b32.xlu0 %v1647_v29, %s1447_s18  ;;  %v247_v35 = vunpack.c.l.b16 %v230_v27  ;;  %304 = vrot.lane.b32.xlu2 %v1653_v32, %s1447_s18  ;;  %v536_v43 = vunpack.c.h.b16 %v236_v21  ;;  %v533_v45 = vunpack.c.h.b16 %v230_v27 }
  0x3b   : > { %v250_v36 = vunpack.c.l.b16 %v232_v30  ;;  %v1658_v39 = vpack.c.b16 %v256_v34, %v253_v33  ;;  %v1662_v41 = vpack.c.b16 %v248_v38, %v245_v37  ;;  %v534_v46 = vunpack.c.h.b16 %v232_v30  ;;  %v1229_v33 = vld [vmem:[#allocation5 + $0x8] sm:$0xff] }
  0x3c   : > { %300 = vrot.lane.b32.xlu1 %v1651_v31, %s1447_s18  ;;  %v1673_v44 = vpack.c.b16 %v536_v43, %v535_v42  ;;  %vm672_vm6 = vcmask 973824   ;;  %v1451_v37 = vmov 0   ;;  %vm808_vm7 = vcmask 637952  }
  0x3d   : > { %v1660_v40 = vpack.c.b16 %v250_v36, %v247_v35  ;;  %v1678_v47 = vpack.c.b16 %v534_v46, %v533_v45  ;;  %1307 = vset.pattern.permute.xlu1 %v1451_v37  ;;  %1309 = vset.pattern.permute.xlu0 %v1451_v37  ;;  %vm819_vm8 = vcmask 769024   ;;  %vm1010_vm9 = vcmask 130048  }
  0x3e   : > { %1308 = vset.pattern.permute.xlu2 %v1451_v37 }
  0x42   : > { %308 = vrot.lane.b32.xlu0 %v1658_v39, %s1447_s18  ;;  %298 = vrot.lane.b32.xlu2 %v1662_v41, %s1447_s18 }
  0x44   : > { %302 = vrot.lane.b32.xlu1 %v1660_v40, %s1447_s18  ;;  %s1039_s18 = sshll.u32 %s1036_s25, 4  ;;  %s1040_s18 = int_to_ptr.hbm [resolvable:$true] %s1039_s18 }
  0x4a   : > { %271 = vrot.lane.b32.xlu0 %v1647_v29, %s1448_s23  ;;  %265 = vrot.lane.b32.xlu2 %v1651_v31, %s1448_s23 }
  0x4c   : > { %273 = vrot.lane.b32.xlu1 %v1658_v39, %s1448_s23 }
  0x52   : > { %267 = vrot.lane.b32.xlu0 %v1660_v40, %s1448_s23  ;;  %263 = vrot.lane.b32.xlu2 %v1662_v41, %s1448_s23 }
  0x54   : > { %269 = vrot.lane.b32.xlu1 %v1653_v32, %s1448_s23  ;;  %s1025_s23 = scalar_lea.sflag [#allocation4], %s1569_s10 }
  0x5a   : > { %657 = vrot.lane.b32.xlu0 %v1658_v39, %s1449_s17  ;;  %649 = vrot.lane.b32.xlu2 %v1660_v40, %s1449_s17 }
  0x5c   : > { %659 = vrot.lane.b32.xlu1 %v1673_v44, %s1449_s17 }
  0x62   : > { %651 = vrot.lane.b32.xlu0 %v1678_v47, %s1449_s17  ;;  %655 = vrot.lane.b32.xlu2 %v1647_v29, %s1449_s17 }
  0x64   : > { %653 = vrot.lane.b32.xlu1 %v1653_v32, %s1449_s17 }
  0x6a   : > { %645 = vrot.lane.b32.xlu0 %v1662_v41, %s1449_s17  ;;  %804 = vrot.lane.b32.xlu2 %v1658_v39, %s1450_s21 }
  0x6c   : > { %647 = vrot.lane.b32.xlu1 %v1651_v31, %s1449_s17  ;;  %s1384_s17 = sshra.s32 %s1040_s18, 4  ;;  %s1385_s17 = int_to_ptr.hbm [resolvable:$true] %s1384_s17 }
  0x6d   : > { %p1391_p11 = scmp.lt.s32.totalorder %s1385_s17, %s1966_s3 }
  0x72   : > { %806 = vrot.lane.b32.xlu0 %v1673_v44, %s1450_s21  ;;  %798 = vrot.lane.b32.xlu2 %v1678_v47, %s1450_s21 }
  0x74   : > { %796 = vrot.lane.b32.xlu1 %v1660_v40, %s1450_s21 }
  0x7a   : > { %800 = vrot.lane.b32.xlu0 %v1653_v32, %s1450_s21  ;;  %792 = vrot.lane.b32.xlu2 %v1662_v41, %s1450_s21 }
  0x7c   : > { %802 = vrot.lane.b32.xlu1 %v1647_v29, %s1450_s21 }
  0x82   : > { %794 = vrot.lane.b32.xlu0 %v1651_v31, %s1450_s21  ;;  %s1386_s21 = scalar_lea.hbm %s1385_s17, 128 }
  0x83   : > { %p1387_p1 = scmp.ne.s32.totalorder %s1385_s17, %s1386_s21  ;;  %p1392_p9 = scmp.lt.s32.totalorder %s1390_s27, %s1386_s21 }
  0x85   : > { %p1388_p4 = pnand %p1387_p1, %p1541_p7  ;;  %p1393_p2 = por %p1392_p9, %p1391_p11 }
  0x87   : > { %p1389_p8 = pneg %p1388_p4 }
  0x89   : > { %p1394_p10 = pnand %p1393_p2, %p1389_p8 }
  0x94   : > { %v305_v48 = vpop.permute.xlu2 %304 }
  0x95   : > { %1143 = vmatpush.bf16.msk.msra.mxu0 %vm1142_vm1, %v305_v48 }
  0x9c   : > { %v299_v49 = vpop.permute.xlu2 %298 }
  0x9d   : > { %1145 = vmatpush.bf16.msk.msra.mxu0 %vm1142_vm1, %v299_v49 }
  0xa0   : > { %1146 = vmatmul.msk.bf16.vlgmr.msra.gmra.mxu0 %vm343_vm2, %v1230_v50 }
  0xa4   : > { %v266_v60 = vpop.permute.xlu2 %265 }
  0xac   : > { %v307_v51 = vpop.permute.xlu0 %306  ;;  %v264_v10 = vpop.permute.xlu2 %263 }
  0xad   : > { %v313_v53 = vsel %vm310_vm0, %v305_v48, %v307_v51  ;;  %v276_v17 = vsel %vm275_vm3, %v264_v10, %v266_v60 }
  0xae   : > { %v301_v52 = vpop.permute.xlu1 %300  ;;  %375 = vmatpush.bf16.msra.mxu1 %v313_v53 }
  0xaf   : > { %v311_v55 = vsel %vm310_vm0, %v299_v49, %v301_v52 }
  0xb0   : > { %1147 = vmatmul.msk.bf16.gmra.mxu0 %vm343_vm2, %v1231_v54 }
  0xb2   : > { %376 = vmatpush.bf16.msra.mxu1 %v311_v55 }
  0xb4   : > { %v309_v56 = vpop.permute.xlu0 %308  ;;  %v650_v20 = vpop.permute.xlu2 %649 }
  0xb5   : > { %1148 = vmatmul.msk.bf16.vlgmr.msra.gmra.mxu1 %vm343_vm2, %v1230_v50  ;;  %413 = vmatpush.bf16.msra.mxu3 %v309_v56  ;;  %v314_v58 = vsel %vm310_vm0, %v307_v51, %v309_v56 }
  0xb6   : > { %v303_v57 = vpop.permute.xlu1 %302  ;;  %394 = vmatpush.bf16.msra.mxu2 %v314_v58 }
  0xb7   : > { %v312_v59 = vsel %vm310_vm0, %v301_v52, %v303_v57 }
  0xb9   : > { %414 = vmatpush.bf16.msra.mxu3 %v303_v57 }
  0xba   : > { %395 = vmatpush.bf16.msra.mxu2 %v312_v59  ;;  %v1234_v59 = vld [vmem:[#allocation5 + $0x30] sm:$0xff] }
  0xbc   : > { %v272_v61 = vpop.permute.xlu0 %271  ;;  %1152 = vmatmul.msk.bf16.vlgmr.msra.gmra.mxu3 %vm343_vm2, %v1230_v50  ;;  %v656_v27 = vpop.permute.xlu2 %655 }
  0xbd   : > { %1150 = vmatmul.msk.bf16.vlgmr.msra.gmra.mxu2 %vm343_vm2, %v1230_v50  ;;  %v1233_v50 = vld [vmem:[#allocation5 + $0x28] sm:$0xff] }
  0xbe   : > { %v274_v62 = vpop.permute.xlu1 %273 }
  0xbf   : > { %505 = vmatpush.bf16.msrb.mxu3 %v274_v62  ;;  %v279_v63 = vsel %vm275_vm3, %v272_v61, %v274_v62 }
  0xc0   : > { %486 = vmatpush.bf16.msrb.mxu2 %v279_v63  ;;  %v1236_v63 = vld [vmem:[#allocation5 + $0x40] sm:$0xff] }
  0xc4   : > { %v268_v4 = vpop.permute.xlu0 %267 }
  0xc5   : > { %1149 = vmatmul.msk.bf16.gmra.mxu1 %vm343_vm2, %v1231_v54  ;;  %v277_v12 = vsel %vm275_vm3, %v266_v60, %v268_v4  ;;  %506 = vmatpush.bf16.msrb.mxu3 %v268_v4  ;;  %v209_v60 = vld [vmem:[%s1965_s2] sm:$0xff]  ;;  %v211_v4 = vld [vmem:[%s1965_s2 + $0x10] sm:$0xff] }
  0xc6   : > { %v270_v7 = vpop.permute.xlu1 %269  ;;  %487 = vmatpush.bf16.msrb.mxu2 %v277_v12  ;;  %941 = vperm.xlu1 %1307, %v209_v60  }
  0xc7   : > { %1163 = vmatpush.bf16.msk.msrb.mxu0 %vm1162_vm4, %v270_v7  ;;  %v278_v13 = vsel %vm275_vm3, %v270_v7, %v272_v61  ;;  %v1235_v61 = vld [vmem:[#allocation5 + $0x38] sm:$0xff]  ;;  %951 = vperm.xlu0 %1309, %v211_v4  }
  0xc8   : > { %467 = vmatpush.bf16.msrb.mxu1 %v278_v13 }
  0xc9   : > { %616 = vmatpush.bf16.msra.mxu3 %v1673_v44  ;;  %v805_v44 = vpop.permute.xlu2 %804 }
  0xca   : > { %597 = vmatpush.bf16.msra.mxu2 %v1658_v39 }
  0xcb   : > { %1165 = vmatpush.bf16.msk.msrb.mxu0 %vm1162_vm4, %v264_v10  ;;  %v212_v10 = vld [vmem:[%s1965_s2 + $0x18] sm:$0xff] }
  0xcc   : > { %468 = vmatpush.bf16.msrb.mxu1 %v276_v17  ;;  %1153 = vmatmul.msk.bf16.gmra.mxu3 %vm343_vm2, %v1231_v54  ;;  %v658_v21 = vpop.permute.xlu0 %657  ;;  %v1237_v17 = vld [vmem:[#allocation5 + $0x48] sm:$0xff] }
  0xcd   : > { %1151 = vmatmul.msk.bf16.gmra.mxu2 %vm343_vm2, %v1231_v54  ;;  %617 = vmatpush.bf16.msra.mxu3 %v1678_v47 }
  0xce   : > { %1166 = vmatmul.msk.bf16.vlgmr.msrb.gmra.mxu0 %vm343_vm2, %v1228_v18  ;;  %v660_v19 = vpop.permute.xlu1 %659  ;;  %598 = vmatpush.bf16.msra.mxu2 %v1660_v40 }
  0xcf   : > { %559 = vmatpush.bf16.msra.mxu0 %v1653_v32  ;;  %v667_v30 = vsel %vm661_vm5, %v658_v21, %v660_v19  ;;  %956 = vperm.xlu1 %1307, %v212_v10  }
  0xd0   : > { %578 = vmatpush.bf16.msra.mxu1 %v1647_v29  ;;  %v666_v29 = vsel %vm661_vm5, %v656_v27, %v658_v21  ;;  %v677_v34 = vsel %vm672_vm6, %v667_v30, 0 }
  0xd1   : > { %v799_v53 = vpop.permute.xlu2 %798 }
  0xd3   : > { %560 = vmatpush.bf16.msra.mxu0 %v1662_v41  ;;  %v1232_v41 = vld [vmem:[#allocation5 + $0x20] sm:$0xff] }
  0xd4   : > { %579 = vmatpush.bf16.msra.mxu1 %v1651_v31  ;;  %v652_v32 = vpop.permute.xlu0 %651 }
  0xd5   : > { %1168 = vmatmul.msk.bf16.vlgmr.msrb.gmra.mxu1 %vm343_vm2, %v1228_v18  ;;  %v664_v31 = vsel %vm661_vm5, %v650_v20, %v652_v32 }
  0xd6   : > { %v654_v25 = vpop.permute.xlu1 %653  ;;  %v674_v38 = vsel %vm672_vm6, %v664_v31, 0 }
  0xd7   : > { %v665_v28 = vsel %vm661_vm5, %v654_v25, %v656_v27 }
  0xd8   : > { %725 = vmatpush.bf16.msrb.mxu1 %v666_v29  ;;  %706 = vmatpush.bf16.msrb.mxu0 %v665_v28 }
  0xd9   : > { %v793_v57 = vpop.permute.xlu2 %792 }
  0xdc   : > { %1172 = vmatmul.msk.bf16.vlgmr.msrb.gmra.mxu3 %vm343_vm2, %v1228_v18  ;;  %v646_v39 = vpop.permute.xlu0 %645 }
  0xdd   : > { %1170 = vmatmul.msk.bf16.vlgmr.msrb.gmra.mxu2 %vm343_vm2, %v1228_v18  ;;  %764 = vmatpush.bf16.msrb.mxu3 %v1451_v37  ;;  %v210_v18 = vld [vmem:[%s1965_s2 + $0x8] sm:$0xff] }
  0xde   : > { %1167 = vmatmul.msk.bf16.gmra.mxu0 %vm343_vm2, %v1229_v33  ;;  %v648_v35 = vpop.permute.xlu1 %647  ;;  %744 = vmatpush.bf16.msrb.mxu2 %v677_v34 }
  0xdf   : > { %v663_v36 = vsel %vm661_vm5, %v648_v35, %v650_v20  ;;  %v662_v40 = vsel %vm661_vm5, %v646_v39, %v648_v35  ;;  %946 = vperm.xlu2 %1308, %v210_v18  }
  0xe0   : > { %726 = vmatpush.bf16.msrb.mxu1 %v663_v36  ;;  %707 = vmatpush.bf16.msrb.mxu0 %v662_v40 }
  0xe2   : > { %745 = vmatpush.bf16.msrb.mxu2 %v674_v38 }
  0xe4   : > { %v807_v42 = vpop.permute.xlu0 %806 }
  0xe5   : > { %1169 = vmatmul.msk.bf16.gmra.mxu1 %vm343_vm2, %v1229_v33  ;;  %v814_v49 = vsel %vm808_vm7, %v805_v44, %v807_v42 }
  0xe6   : > { %v797_v43 = vpop.permute.xlu1 %796  ;;  %v824_v51 = vsel %vm819_vm8, %v814_v49, 0 }
  0xe7   : > { %v811_v55 = vsel %vm808_vm7, %v797_v43, %v799_v53 }
  0xe8   : > { %v821_v56 = vsel %vm819_vm8, %v811_v55, 0 }
  0xec   : > { %1173 = vmatmul.msk.bf16.gmra.mxu3 %vm343_vm2, %v1229_v33  ;;  %v801_v45 = vpop.permute.xlu0 %800 }
  0xed   : > { %1171 = vmatmul.msk.bf16.gmra.mxu2 %vm343_vm2, %v1229_v33 }
  0xee   : > { %1182 = vmatmul.msk.bf16.vlgmr.msra.gmra.mxu0 %vm343_vm2, %v1232_v41  ;;  %v803_v46 = vpop.permute.xlu1 %802 }
  0xef   : > { %v812_v47 = vsel %vm808_vm7, %v801_v45, %v803_v46  ;;  %v813_v48 = vsel %vm808_vm7, %v803_v46, %v805_v44 }
  0xf0   : > { %853 = vmatpush.bf16.msra.mxu0 %v812_v47 }
  0xf4   : > { %v795_v52 = vpop.permute.xlu0 %794 }
  0xf5   : > { %1184 = vmatmul.msk.bf16.vlgmr.msra.gmra.mxu1 %vm343_vm2, %v1232_v41  ;;  %v810_v54 = vsel %vm808_vm7, %v795_v52, %v797_v43  ;;  %v809_v58 = vsel %vm808_vm7, %v793_v57, %v795_v52 }
  0xf6   : > { %872 = vmatpush.bf16.msra.mxu1 %v813_v48  ;;  %854 = vmatpush.bf16.msra.mxu0 %v809_v58 }
  0xfa   : > { %873 = vmatpush.bf16.msra.mxu1 %v810_v54 }
  0xfc   : > { %1188 = vmatmul.msk.bf16.vlgmr.msra.gmra.mxu3 %vm343_vm2, %v1232_v41 }
  0xfd   : > { %1186 = vmatmul.msk.bf16.vlgmr.msra.gmra.mxu2 %vm343_vm2, %v1232_v41  ;;  %911 = vmatpush.bf16.msra.mxu3 %v1451_v37 }
  0xfe   : > { %1183 = vmatmul.msk.bf16.gmra.mxu0 %vm343_vm2, %v1233_v50  ;;  %891 = vmatpush.bf16.msra.mxu2 %v824_v51 }
 0x102   : > { %892 = vmatpush.bf16.msra.mxu2 %v821_v56 }
 0x105   : > { %1185 = vmatmul.msk.bf16.gmra.mxu1 %vm343_vm2, %v1233_v50 }
 0x10c   : > { %1189 = vmatmul.msk.bf16.gmra.mxu3 %vm343_vm2, %v1233_v50 }
 0x10d   : > { %1187 = vmatmul.msk.bf16.gmra.mxu2 %vm343_vm2, %v1233_v50 }
 0x10e   : > { %1198 = vmatmul.msk.bf16.vlgmr.msrb.gmra.mxu0 %vm343_vm2, %v1234_v59 }
 0x115   : > { %1200 = vmatmul.msk.bf16.vlgmr.msrb.gmra.mxu1 %vm343_vm2, %v1234_v59 }
 0x11c   : > { %1204 = vmatmul.msk.bf16.vlgmr.msrb.gmra.mxu3 %vm343_vm2, %v1234_v59 }
 0x11d   : > { %1202 = vmatmul.msk.bf16.vlgmr.msrb.gmra.mxu2 %vm343_vm2, %v1234_v59  ;;  %v359_v62 = vpop.f32.mrf.mxu0 }
 0x11e   : > { %1199 = vmatmul.msk.bf16.gmra.mxu0 %vm343_vm2, %v1235_v61 }
 0x125   : > { %1201 = vmatmul.msk.bf16.gmra.mxu1 %vm343_vm2, %v1235_v61  ;;  %v361_v7 = vpop.f32.mrf.mxu0 }
 0x12c   : > { %1205 = vmatmul.msk.bf16.gmra.mxu3 %vm343_vm2, %v1235_v61 }
 0x12d   : > { %1203 = vmatmul.msk.bf16.gmra.mxu2 %vm343_vm2, %v1235_v61  ;;  %v364_v13 = vpop.f32.mrf.mxu0 }
 0x12e   : > { %1214 = vmatmul.msk.bf16.vlgmr.msra.gmra.mxu0 %vm343_vm2, %v1236_v63 }
 0x132   : > { %v378_v12 = vpop.f32.mrf.mxu1 }
 0x135   : > { %1216 = vmatmul.msk.bf16.vlgmr.msra.gmra.mxu1 %vm343_vm2, %v1236_v63  ;;  %v366_v25 = vpop.f32.mrf.mxu0 }
 0x13a   : > { %v380_v19 = vpop.f32.mrf.mxu1 }
 0x13c   : > { %1220 = vmatmul.msk.bf16.vlgmr.msra.gmra.mxu3 %vm343_vm2, %v1236_v63 }
 0x13d   : > { %1218 = vmatmul.msk.bf16.vlgmr.msra.gmra.mxu2 %vm343_vm2, %v1236_v63 }
 0x13e   : > { %1215 = vmatmul.msk.bf16.gmra.mxu0 %vm343_vm2, %v1237_v17 }
 0x13f   : > { %v416_v20 = vpop.f32.mrf.mxu3 }
 0x140   : > { %v397_v21 = vpop.f32.mrf.mxu2 }
 0x142   : > { %v383_v27 = vpop.f32.mrf.mxu1 }
 0x145   : > { %1217 = vmatmul.msk.bf16.gmra.mxu1 %vm343_vm2, %v1237_v17 }
 0x147   : > { %v418_v28 = vpop.f32.mrf.mxu3 }
 0x148   : > { %v399_v29 = vpop.f32.mrf.mxu2 }
 0x14a   : > { %v385_v32 = vpop.f32.mrf.mxu1 }
 0x14b   : > { %v451_v30 = vpop.f32.mrf.mxu0 }
 0x14c   : > { %v452_v33 = vadd.f32 %v451_v30, %v359_v62  ;;  %1221 = vmatmul.msk.bf16.gmra.mxu3 %vm343_vm2, %v1237_v17 }
 0x14d   : > { %1219 = vmatmul.msk.bf16.gmra.mxu2 %vm343_vm2, %v1237_v17 }
 0x14f   : > { %v421_v34 = vpop.f32.mrf.mxu3 }
 0x150   : > { %v402_v31 = vpop.f32.mrf.mxu2 }
 0x152   : > { %v470_v36 = vpop.f32.mrf.mxu1 }
 0x153   : > { %v453_v35 = vpop.f32.mrf.mxu0  ;;  %v1777_v38 = vadd.f32 %v470_v36, %v378_v12 }
 0x154   : > { %v1775_v37 = vadd.f32 %v453_v35, %v361_v7 }
 0x157   : > { %v423_v39 = vpop.f32.mrf.mxu3 }
 0x158   : > { %v404_v40 = vpop.f32.mrf.mxu2 }
 0x15a   : > { %v472_v42 = vpop.f32.mrf.mxu1 }
 0x15b   : > { %v456_v41 = vpop.f32.mrf.mxu0  ;;  %v1781_v44 = vadd.f32 %v472_v42, %v380_v19 }
 0x15c   : > { %v1779_v43 = vadd.f32 %v456_v41, %v364_v13 }
 0x15f   : > { %v508_v45 = vpop.f32.mrf.mxu3 }
 0x160   : > { %v1783_v46 = vadd.f32 %v508_v45, %v416_v20  ;;  %v489_v47 = vpop.f32.mrf.mxu2 }
 0x161   : > { %v1785_v48 = vadd.f32 %v489_v47, %v397_v21 }
 0x162   : > { %v475_v50 = vpop.f32.mrf.mxu1 }
 0x163   : > { %v458_v49 = vpop.f32.mrf.mxu0  ;;  %v1789_v52 = vadd.f32 %v475_v50, %v383_v27 }
 0x164   : > { %v1787_v51 = vadd.f32 %v458_v49, %v366_v25 }
 0x167   : > { %v510_v53 = vpop.f32.mrf.mxu3 }
 0x168   : > { %v1791_v54 = vadd.f32 %v510_v53, %v418_v28  ;;  %v491_v55 = vpop.f32.mrf.mxu2 }
 0x169   : > { %v1793_v56 = vadd.f32 %v491_v55, %v399_v29 }
 0x16a   : > { %v477_v58 = vpop.f32.mrf.mxu1 }
 0x16b   : > { %v562_v57 = vpop.f32.mrf.mxu0  ;;  %v1795_v59 = vadd.f32 %v477_v58, %v385_v32 }
 0x16c   : > { %v629_v53 = vadd.f32 %v562_v57, %v452_v33 }
 0x16f   : > { %v513_v60 = vpop.f32.mrf.mxu3 }
 0x170   : > { %v1797_v61 = vadd.f32 %v513_v60, %v421_v34  ;;  %v494_v62 = vpop.f32.mrf.mxu2 }
 0x171   : > { %v1799_v63 = vadd.f32 %v494_v62, %v402_v31  ;;  %v942_v62 = vpop.permute.xlu1 %941 }
 0x172   : > { %v581_v7 = vpop.f32.mrf.mxu1 }
 0x173   : > { %v564_v4 = vpop.f32.mrf.mxu0 }
 0x174   : > { %v633_v11 = vadd.f32 %v564_v4, %v1775_v37 }
 0x177   : > { %v515_v10 = vpop.f32.mrf.mxu3 }
 0x178   : > { %v1801_v12 = vadd.f32 %v515_v10, %v423_v39  ;;  %v496_v13 = vpop.f32.mrf.mxu2 }
 0x179   : > { %v1803_v17 = vadd.f32 %v496_v13, %v404_v40 }
 0x17a   : > { %1982 = vst [vmem:[#allocation16_spill] sm:$0xff] %v1801_v12  ;;  %v583_v19 = vpop.f32.mrf.mxu1 }
 0x17b   : > { %1983 = vst [vmem:[#allocation17_spill] sm:$0xff] %v1803_v17  ;;  %v567_v18 = vpop.f32.mrf.mxu0 }
 0x17f   : > { %v619_v20 = vpop.f32.mrf.mxu3 }
 0x180   : > { %v1805_v21 = vpop.f32.mrf.mxu2 }
 0x182   : > { %v1809_v27 = vpop.f32.mrf.mxu1 }
 0x183   : > { %v1807_v25 = vpop.f32.mrf.mxu0 }
 0x187   : > { %v1811_v28 = vpop.f32.mrf.mxu3 }
 0x188   : > { %v1813_v29 = vpop.f32.mrf.mxu2 }
 0x18a   : > { %v1815_v32 = vpop.f32.mrf.mxu1 }
 0x18b   : > { %v709_v30 = vpop.f32.mrf.mxu0 }
 0x18c   : > { %v776_v60 = vadd.f32 %v709_v30, %v629_v53  ;;  %v1838_v53 = vpop.permute.xlu2 %946 }
 0x18f   : > { %v1817_v34 = vpop.f32.mrf.mxu3 }
 0x190   : > { %v1819_v31 = vpop.f32.mrf.mxu2 }
 0x192   : > { %v728_v36 = vpop.f32.mrf.mxu1 }
 0x193   : > { %v711_v35 = vpop.f32.mrf.mxu0 }
 0x194   : > { %v780_v57 = vadd.f32 %v711_v35, %v633_v11  ;;  %v634_v11 = vadd.f32 %v583_v19, %v1781_v44 }
 0x197   : > { %v1821_v39 = vpop.f32.mrf.mxu3 }
 0x198   : > { %1984 = vst [vmem:[#allocation18_spill] sm:$0xff] %v1821_v39  ;;  %v1823_v40 = vpop.f32.mrf.mxu2 }
 0x199   : > { %1985 = vst [vmem:[#allocation19_spill] sm:$0xff] %v1823_v40  ;;  %v630_v40 = vadd.f32 %v581_v7, %v1777_v38  ;;  %v637_v38 = vadd.f32 %v567_v18, %v1779_v43  ;;  %v632_v18 = vadd.f32 %v619_v20, %v1783_v46 }
 0x19a   : > { %v730_v42 = vpop.f32.mrf.mxu1 }
 0x19b   : > { %v714_v41 = vpop.f32.mrf.mxu0  ;;  %v777_v39 = vadd.f32 %v728_v36, %v630_v40  ;;  %v1854_v40 = vpop.permute.xlu0 %951 }
 0x19c   : > { %v784_v36 = vadd.f32 %v714_v41, %v637_v38  ;;  %v641_v41 = vadd.f32 %v1807_v25, %v1787_v51  ;;  %v1869_v51 = vpop.permute.xlu1 %956 }
 0x19f   : > { %v766_v45 = vpop.f32.mrf.mxu3 }
 0x1a0   : > { %v747_v47 = vpop.f32.mrf.mxu2 }
 0x1a2   : > { %v733_v50 = vpop.f32.mrf.mxu1 }
 0x1a3   : > { %v716_v49 = vpop.f32.mrf.mxu0 }
 0x1a7   : > { %v1825_v55 = vpop.f32.mrf.mxu3 }
 0x1a8   : > { %v1827_v58 = vpop.f32.mrf.mxu2 }
 0x1aa   : > { %v1829_v13 = vpop.f32.mrf.mxu1 }
 0x1ab   : > { %v856_v10 = vpop.f32.mrf.mxu0 }
 0x1ac   : > { %v923_v15 = vadd.f32 %v856_v10, %v776_v60 }
 0x1ae   : > { %v959_v16 = vadd.f32 %v942_v62, %v923_v15 }
 0x1af   : > { %v1834_v14 = vpop.f32.mrf.mxu3 }
 0x1b0   : > { %v975_v17 = vadd.f32 %v959_v16, %v1600_v5  ;;  %v1836_v33 = vpop.f32.mrf.mxu2 }
 0x1b2   : > { %v991_v30 = vmax.f32 %v975_v17, 0.0  ;;  %v875_v3 = vpop.f32.mrf.mxu1 }
 0x1b3   : > { %v858_v12 = vpop.f32.mrf.mxu0  ;;  %v924_v37 = vadd.f32 %v875_v3, %v777_v39 }
 0x1b4   : > { %1007 = vst [vmem:[%s1842_s6] sm:$0xff] %v991_v30  ;;  %v927_v15 = vadd.f32 %v858_v12, %v780_v57  ;;  %v781_v12 = vadd.f32 %v730_v42, %v634_v11  ;;  %v779_v42 = vadd.f32 %v766_v45, %v632_v18  ;;  %v638_v57 = vadd.f32 %v1809_v27, %v1789_v52 }
 0x1b5   : > { %v960_v5 = vadd.f32 %v942_v62, %v924_v37  ;;  %v788_v37 = vadd.f32 %v716_v49, %v641_v41  ;;  %v635_v49 = vadd.f32 %v1813_v29, %v1793_v56 }
 0x1b6   : > { %v963_v16 = vadd.f32 %v1838_v53, %v927_v15 }
 0x1b7   : > { %v976_v4 = vadd.f32 %v960_v5, %v1603_v6  ;;  %v1850_v17 = vpop.f32.mrf.mxu3  ;;  %v631_v6 = vadd.f32 %v1805_v21, %v1785_v48  ;;  %v785_v5 = vadd.f32 %v733_v50, %v638_v57  ;;  %v782_v56 = vadd.f32 %v1827_v58, %v635_v49  ;;  %v1994_v49 = vld [vmem:[#allocation14_spill] sm:$0xff] }
 0x1b8   : > { %v979_v7 = vadd.f32 %v963_v16, %v1608_v8  ;;  %v1852_v35 = vpop.f32.mrf.mxu2 }
 0x1b9   : > { %v992_v3 = vmax.f32 %v976_v4, 0.0  ;;  %v778_v30 = vadd.f32 %v747_v47, %v631_v6 }
 0x1ba   : > { %v995_v39 = vmax.f32 %v979_v7, 0.0  ;;  %v877_v10 = vpop.f32.mrf.mxu1 }
 0x1bb   : > { %v861_v60 = vpop.f32.mrf.mxu0  ;;  %1008 = vst [vmem:[%s1842_s6 + $0x8] sm:$0xff] %v992_v3  ;;  %v928_v44 = vadd.f32 %v877_v10, %v781_v12 }
 0x1bc   : > { %v931_v43 = vadd.f32 %v861_v60, %v784_v36  ;;  %1012 = vst [vmem:[%s1842_s6 + $0x20] sm:$0xff] %v995_v39  ;;  %v642_v36 = vadd.f32 %v1815_v32, %v1795_v59 }
 0x1bd   : > { %v964_v8 = vadd.f32 %v1838_v53, %v928_v44 }
 0x1be   : > { %v967_v19 = vadd.f32 %v1854_v40, %v931_v43  ;;  %v789_v60 = vadd.f32 %v1829_v13, %v642_v36  ;;  %v640_v43 = vadd.f32 %v1817_v34, %v1797_v61  ;;  %v639_v13 = vadd.f32 %v1819_v31, %v1799_v63 }
 0x1bf   : > { %v980_v15 = vadd.f32 %v964_v8, %v1611_v9  ;;  %v913_v20 = vpop.f32.mrf.mxu3 }
 0x1c0   : > { %v983_v46 = vadd.f32 %v967_v19, %v1586_v0  ;;  %v926_v48 = vadd.f32 %v913_v20, %v779_v42  ;;  %v894_v21 = vpop.f32.mrf.mxu2  ;;  %v636_v0 = vadd.f32 %v1811_v28, %v1791_v54  ;;  %v787_v8 = vadd.f32 %v1834_v14, %v640_v43  ;;  %v1986_v42 = vld [vmem:[#allocation11_spill] sm:$0xff] }
 0x1c1   : > { %v996_v16 = vmax.f32 %v980_v15, 0.0  ;;  %v925_v11 = vadd.f32 %v894_v21, %v778_v30  ;;  %v1988_v30 = vld [vmem:[#allocation18_spill] sm:$0xff] }
 0x1c2   : > { %v999_v38 = vmax.f32 %v983_v46, 0.0  ;;  %v962_v25 = vadd.f32 %v942_v62, %v926_v48  ;;  %v880_v52 = vpop.f32.mrf.mxu1  ;;  %v783_v54 = vadd.f32 %v1825_v55, %v636_v0  ;;  %v1989_v46 = vld [vmem:[#allocation13_spill] sm:$0xff]  ;;  %v1991_v48 = vld [vmem:[#allocation19_spill] sm:$0xff] }
 0x1c3   : > { %v863_v45 = vpop.f32.mrf.mxu0  ;;  %1013 = vst [vmem:[%s1842_s6 + $0x28] sm:$0xff] %v996_v16  ;;  %v961_v27 = vadd.f32 %v942_v62, %v925_v11  ;;  %v932_v9 = vadd.f32 %v880_v52, %v785_v5  ;;  %v1992_v5 = vld [vmem:[#allocation12_spill] sm:$0xff] }
 0x1c4   : > { %v935_v47 = vadd.f32 %v863_v45, %v788_v37  ;;  %1016 = vst [vmem:[%s1842_s6 + $0x40] sm:$0xff] %v999_v38  ;;  %v978_v50 = vadd.f32 %v962_v25, %v1637_v23  ;;  %v1990_v37 = vld [vmem:[#allocation17_spill] sm:$0xff] }
 0x1c5   : > { %v977_v4 = vadd.f32 %v961_v27, %v1634_v22  ;;  %v968_v7 = vadd.f32 %v1854_v40, %v932_v9  ;;  %v643_v21 = vadd.f32 %v1991_v48, %v1990_v37 }
 0x1c6   : > { %v971_v62 = vadd.f32 %v1869_v51, %v935_v47  ;;  %v994_v28 = vmax.f32 %v978_v50, 0.0 }
 0x1c7   : > { %v993_v29 = vmax.f32 %v977_v4, 0.0  ;;  %v984_v23 = vadd.f32 %v968_v7, %v1589_v1  ;;  %v915_v22 = vpop.f32.mrf.mxu3  ;;  %v790_v25 = vadd.f32 %v1852_v35, %v643_v21  ;;  %v1993_v35 = vld [vmem:[#allocation15_spill] sm:$0xff] }
 0x1c8   : > { %v987_v12 = vadd.f32 %v971_v62, %v1592_v2  ;;  %1011 = vst.msk [vmem:[%s1842_s6 + $0x18] sm:$0xff] %vm1010_vm9, %v994_v28  ;;  %v930_v3 = vadd.f32 %v915_v22, %v783_v54  ;;  %v896_v39 = vpop.f32.mrf.mxu2 }
 0x1c9   : > { %1009 = vst [vmem:[%s1842_s6 + $0x10] sm:$0xff] %v993_v29  ;;  %v1000_v59 = vmax.f32 %v984_v23, 0.0  ;;  %v929_v55 = vadd.f32 %v896_v39, %v782_v56 }
 0x1ca   : > { %v1003_v32 = vmax.f32 %v987_v12, 0.0  ;;  %v966_v10 = vadd.f32 %v1838_v53, %v930_v3  ;;  %v882_v58 = vpop.f32.mrf.mxu1 }
 0x1cb   : > { %1017 = vst [vmem:[%s1842_s6 + $0x48] sm:$0xff] %v1000_v59  ;;  %v965_v1 = vadd.f32 %v1838_v53, %v929_v55  ;;  %v936_v2 = vadd.f32 %v882_v58, %v789_v60  ;;  %v786_v53 = vadd.f32 %v1836_v33, %v639_v13  ;;  %v1987_v33 = vld [vmem:[#allocation16_spill] sm:$0xff] }
 0x1cc   : > { %1020 = vst [vmem:[%s1842_s6 + $0x60] sm:$0xff] %v1003_v32  ;;  %v982_v44 = vadd.f32 %v966_v10, %v1643_v26  ;;  %v644_v15 = vadd.f32 %v1988_v30, %v1987_v33 }
 0x1cd   : > { %v981_v18 = vadd.f32 %v965_v1, %v1640_v24  ;;  %v972_v6 = vadd.f32 %v1869_v51, %v936_v2 }
 0x1ce   : > { %v998_v19 = vmax.f32 %v982_v44, 0.0  ;;  %v791_v38 = vadd.f32 %v1850_v17, %v644_v15 }
 0x1cf   : > { %v997_v41 = vmax.f32 %v981_v18, 0.0  ;;  %v988_v61 = vadd.f32 %v972_v6, %v1986_v42  ;;  %v918_v34 = vpop.f32.mrf.mxu3 }
 0x1d0   : > { %1015 = vst.msk [vmem:[%s1842_s6 + $0x38] sm:$0xff] %vm1010_vm9, %v998_v19  ;;  %v934_v26 = vadd.f32 %v918_v34, %v787_v8  ;;  %v899_v57 = vpop.f32.mrf.mxu2 }
 0x1d1   : > { %1014 = vst [vmem:[%s1842_s6 + $0x30] sm:$0xff] %v997_v41  ;;  %v1004_v63 = vmax.f32 %v988_v61, 0.0  ;;  %v933_v24 = vadd.f32 %v899_v57, %v786_v53 }
 0x1d2   : > { %v970_v31 = vadd.f32 %v1854_v40, %v934_v26 }
 0x1d3   : > { %1021 = vst [vmem:[%s1842_s6 + $0x68] sm:$0xff] %v1004_v63  ;;  %v969_v14 = vadd.f32 %v1854_v40, %v933_v24 }
 0x1d4   : > { %v986_v20 = vadd.f32 %v970_v31, %v1989_v46 }
 0x1d5   : > { %v985_v16 = vadd.f32 %v969_v14, %v1992_v5 }
 0x1d6   : > { %v1002_v11 = vmax.f32 %v986_v20, 0.0 }
 0x1d7   : > { %v1001_v45 = vmax.f32 %v985_v16, 0.0  ;;  %v920_v52 = vpop.f32.mrf.mxu3 }
 0x1d8   : > { %1019 = vst.msk [vmem:[%s1842_s6 + $0x58] sm:$0xff] %vm1010_vm9, %v1002_v11  ;;  %v938_v40 = vadd.f32 %v920_v52, %v791_v38  ;;  %v901_v27 = vpop.f32.mrf.mxu2 }
 0x1d9   : > { %1018 = vst [vmem:[%s1842_s6 + $0x50] sm:$0xff] %v1001_v45  ;;  %v937_v47 = vadd.f32 %v901_v27, %v790_v25 }
 0x1da   : > { %v974_v17 = vadd.f32 %v1869_v51, %v938_v40 }
 0x1db   : > { %v973_v9 = vadd.f32 %v1869_v51, %v937_v47 }
 0x1dc   : > { %v990_v0 = vadd.f32 %v974_v17, %v1993_v35 }
 0x1dd   : > { %v989_v50 = vadd.f32 %v973_v9, %v1994_v49 }
 0x1de   : > { %v1006_v4 = vmax.f32 %v990_v0, 0.0 }
 0x1df   : > { %v1005_v7 = vmax.f32 %v989_v50, 0.0 }
 0x1e0   : > { %1023 = vst.msk [vmem:[%s1842_s6 + $0x78] sm:$0xff] %vm1010_vm9, %v1006_v4 }
 0x1e1   : > { %1022 = vst [vmem:[%s1842_s6 + $0x70] sm:$0xff] %v1005_v7 }
 0x1e2   : > { %1397 = shalt.err (!%p1394_p10)
}
 0x1e3   : > { %s1452_s10 = smov 512   ;;  %s1453_s30 = smov 32  }
 0x1e4   : > { %1245 = dma.vmem_to_hbm [thread:$0]  (%p1541_p7), %s1038_s16, 2048, %s1040_s18, %s1025_s23, %s1452_s10, %s1452_s10, %s1453_s30  }
 0x1e5 PF: > { %s1054_s7 = sand.u32 1, %s1428_s12   ;;  %p1995_p12 = scmp.ge.s32.totalorder %s1440_s15, 2 }
 0x1e6   : > { %s1055_s8 = scalar_lea.sflag [#allocation4], %s1054_s7 }
 0x1e7   : > { %p1256_p13 = pnand %p1995_p12, %p1509_p6 }
 0x1e9   : > { %p1257_p0 = pneg %p1256_p13 }
 0x1eb   : > { %1423 = dma.done.wait (%p1257_p0), %s1055_s8, 2048  }
 0x1ec   : > { %1425 = vsyncadd (%p1257_p0), %s1055_s8, 4294965248  ;;  %p17_p3 = scmp.ge.s32.totalorder %s1527_s26, 4   ;;  %s1996_s12 = smov %s1432_s13 }
 0x1ed   : > { %s1997_s13 = smov %s1436_s14  ;;  %s1998_s14 = smov %s1537_s4 }
 0x1ee   : > { %s1999_s15 = smov %s1527_s26  ;;  %19 = sbr.rel (!%p17_p3) target bundleno = 6 (0x6), region = 85 }
 0x1f3   :  { %1061 = vsyncpa [#allocation3], 1 }
 0x1f4   :  { %1063 = vsyncpa [#allocation3 + $0x1], 1 }
 0x1f5   :  { %1064 = vsyncpa [#allocation6], 1 }
 0x1f6   :  { %1065 = vsyncpa [#allocation4], 1 }
 0x1f7   :  { %1067 = vsyncpa [#allocation4 + $0x1], 1 }

</bundles_post_ra>
